<compile_context>
chip_gen: v7x
topology: tpu7x:2x2x1
jax: 0.10.0
libtpu: 0.0.40
codegen_flags: <defaults>
</compile_context>

<pallas_src>
import numpy as np
import jax
import jax.numpy as jnp
from jax.experimental import pallas as pl
from jax.experimental.pallas import tpu as pltpu

# Geometry implied by the PyTorch module (fc1 in_features = 1024 = 16*8*8 forces
# the 10 -> 9 -> 8 spatial shrink of two 2x2 valid convs).
B = 2
C_IN, H_IN, W_IN = 4, 10, 10
C1, OH1, OW1 = 16, 9, 9
C2, OH2, OW2 = 16, 8, 8
FLAT = C2 * OH2 * OW2          # 1024
NCLS = 8
LANE2 = OW2 * C2               # 128 (conv2 slab row width = one lane width)
R1 = B * H_IN - 1              # 19 rows of batched conv1 output (incl. seam junk)
R2 = B * H_IN - 2              # 18 rows of batched conv2 output (incl. seam junk)


# ---------------------------------------------------------------------------
# Fused Pallas kernel: conv1+sig -> conv2+sig -> flatten -> folded fc -> log_softmax
# ---------------------------------------------------------------------------
def _fused_cnn_kernel(x_ref,               # [B*H_IN, W_IN*C_IN]   input slab (NHWC rows)
                      m1a_ref, m1b_ref,    # [40, 144]             conv1 band mats (kh=0,1)
                      b1_ref,              # [1, 144]
                      m2a_ref, m2b_ref,    # [144, 128]            conv2 band mats
                      b2_ref,              # [1, 128]
                      wh_ref,              # [1024, 8]             folded fc1@fc2 (rows permuted)
                      bh_ref,              # [1, 8]
                      o_ref,               # [B, 8]
                      h1_scr,              # VMEM [19, 144]
                      h2_scr,              # VMEM [18, 128]
                      flat_scr):           # VMEM [B, 1024]
    # conv1 (4->16, 2x2 valid) + sigmoid over the WHOLE batch: two row-shifted
    # band matmuls, K=40.  Row r corresponds to (image b, oh) = divmod(r, H_IN);
    # rows crossing an image seam (oh == 9) are junk and never read below.
    z1 = (jnp.dot(x_ref[0:R1, :], m1a_ref[...],
                  preferred_element_type=jnp.float32)
          + jnp.dot(x_ref[1:R1 + 1, :], m1b_ref[...],
                    preferred_element_type=jnp.float32)
          + b1_ref[...])
    h1_scr[...] = jax.nn.sigmoid(z1)                       # [19, 144], VMEM resident

    # conv2 (16->16, 2x2 valid) + sigmoid: K=144, lane-dense 128-wide rows.
    # Valid rows for image b sit at b*H_IN + oh, oh in [0, 8); seam rows are junk.
    z2 = (jnp.dot(h1_scr[0:R2, :], m2a_ref[...],
                  preferred_element_type=jnp.float32)
          + jnp.dot(h1_scr[1:R2 + 1, :], m2b_ref[...],
                    preferred_element_type=jnp.float32)
          + b2_ref[...])
    h2_scr[...] = jax.nn.sigmoid(z2)                       # [18, 128]

    # flatten: pack each image's 8 valid [1, 128] conv2 rows into one
    # lane-dense [1, 1024] row, order (h, w, c); the head weight rows were
    # permuted once in prepare_params() to match.
    for b in range(B):
        for oh in range(OH2):
            flat_scr[b:b + 1, oh * LANE2:(oh + 1) * LANE2] = \
                h2_scr[b * H_IN + oh: b * H_IN + oh + 1, :]

    # folded fc1.fc2 head (single K=1024 dot) + numerically stable log_softmax.
    z = (jnp.dot(flat_scr[...], wh_ref[...], preferred_element_type=jnp.float32)
         + bh_ref[...])
    m = jnp.max(z, axis=-1, keepdims=True)
    lse = jnp.log(jnp.sum(jnp.exp(z - m), axis=-1, keepdims=True)) + m
    o_ref[...] = z - lse


# ---------------------------------------------------------------------------
# Forward wrapper: one pallas_call, whole (tiny) operands as single VMEM blocks.
# For large B, tile the batch with a grid and dimension_semantics=("parallel",).
# ---------------------------------------------------------------------------
def cnn_forward(x, prep):
    """x: [B, C_IN, H_IN, W_IN] (NCHW, PyTorch layout); prep: prepare_params() output."""
    m1a, m1b, b1r, m2a, m2b, b2r, wh, bh = prep
    # Pure layout glue (3 KiB): NCHW -> [B*H, W*C] slab; all compute is in the kernel.
    x_slab = jnp.transpose(x, (0, 2, 3, 1)).reshape(B * H_IN, W_IN * C_IN)
    return pl.pallas_call(
        _fused_cnn_kernel,
        out_shape=jax.ShapeDtypeStruct((B, NCLS), jnp.float32),
        in_specs=[
            pl.BlockSpec((B * H_IN, W_IN * C_IN), lambda: (0, 0)),
            pl.BlockSpec((W_IN * C_IN, OW1 * C1), lambda: (0, 0)),
            pl.BlockSpec((W_IN * C_IN, OW1 * C1), lambda: (0, 0)),
            pl.BlockSpec((1, OW1 * C1), lambda: (0, 0)),
            pl.BlockSpec((OW1 * C1, OW2 * C2), lambda: (0, 0)),
            pl.BlockSpec((OW1 * C1, OW2 * C2), lambda: (0, 0)),
            pl.BlockSpec((1, OW2 * C2), lambda: (0, 0)),
            pl.BlockSpec((FLAT, NCLS), lambda: (0, 0)),
            pl.BlockSpec((1, NCLS), lambda: (0, 0)),
        ],
        out_specs=pl.BlockSpec((B, NCLS), lambda: (0, 0)),
        scratch_shapes=[
            pltpu.VMEM((R1, OW1 * C1), jnp.float32),    # batched conv1 slab
            pltpu.VMEM((R2, OW2 * C2), jnp.float32),    # batched conv2 slab
            pltpu.VMEM((B, FLAT), jnp.float32),         # flattened features
        ],
    )(x_slab, m1a, m1b, b1r, m2a, m2b, b2r, wh, bh)


# ---------------------------------------------------------------------------
# One-time weight preprocessing (hoisted out of the forward pass)
# ---------------------------------------------------------------------------
def _conv_band_mats(w, width):
    """Band matrices for a valid conv on a [H, width*IC] slab (cols = w*IC + ic).

    Returns KH matrices M_i of shape [width*IC, OW*OC] such that
        out_slab = sum_i in_slab[i:i+OH, :] @ M_i
    reproduces out[oc, oh, ow] = sum_{ic,i,j} in[ic, oh+i, ow+j] * w[oc, ic, i, j].
    """
    w = np.asarray(w)
    OC, IC, KH, KW = w.shape
    OW = width - KW + 1
    mats = []
    for i in range(KH):
        M = np.zeros((width * IC, OW * OC), np.float32)
        for j in range(KW):
            blk = w[:, :, i, j].T                       # [IC, OC]
            for ow in range(OW):
                M[(ow + j) * IC:(ow + j + 1) * IC, ow * OC:(ow + 1) * OC] = blk
        mats.append(jnp.asarray(M))
    return mats


def prepare_params(raw):
    w1, b1, w2, b2, fw1, fb1, fw2, fb2 = raw
    m1a, m1b = _conv_band_mats(w1, W_IN)                # 2 x [40, 144]
    m2a, m2b = _conv_band_mats(w2, OW1)                 # 2 x [144, 128]
    b1r = jnp.tile(b1, OW1)[None, :]                    # [1, 144]  (col order ow*C1 + oc)
    b2r = jnp.tile(b2, OW2)[None, :]                    # [1, 128]
    # Fold fc1 and fc2:  logits = flat @ (fw1.T @ fw2.T) + (fb1 @ fw2.T + fb2)
    w_fold = fw1.T @ fw2.T                              # [1024, 8], rows in (c, h, w) order
    b_fold = (fb1 @ fw2.T + fb2)[None, :]               # [1, 8]
    # Permute rows from PyTorch flatten order (c, h, w) to the kernel's (h, w, c).
    wh = (w_fold.reshape(C2, OH2, OW2, NCLS)
                .transpose(1, 2, 0, 3)
                .reshape(FLAT, NCLS))
    return (m1a, m1b, b1r, m2a, m2b, b2r, wh, b_fold)


# ---------------------------------------------------------------------------
# Deterministic parameter init + plain-JAX reference of the PyTorch forward
# ---------------------------------------------------------------------------
def make_params(key):
    ks = jax.random.split(key, 8)
    w1 = jax.random.normal(ks[0], (16, 4, 2, 2), jnp.float32) * 0.1
    b1 = jax.random.normal(ks[1], (16,), jnp.float32) * 0.1
    w2 = jax.random.normal(ks[2], (16, 16, 2, 2), jnp.float32) * 0.1
    b2 = jax.random.normal(ks[3], (16,), jnp.float32) * 0.1
    fw1 = jax.random.normal(ks[4], (64, 1024), jnp.float32) * 0.02
    fb1 = jax.random.normal(ks[5], (64,), jnp.float32) * 0.02
    fw2 = jax.random.normal(ks[6], (8, 64), jnp.float32) * 0.1
    fb2 = jax.random.normal(ks[7], (8,), jnp.float32) * 0.1
    return (w1, b1, w2, b2, fw1, fb1, fw2, fb2)


def reference_forward(x, raw):
    w1, b1, w2, b2, fw1, fb1, fw2, fb2 = raw

    def conv(inp, w, b):
        y = jax.lax.conv_general_dilated(
            inp, w, (1, 1), "VALID", dimension_numbers=("NCHW", "OIHW", "NCHW"))
        return jax.nn.sigmoid(y + b[None, :, None, None])

    h = conv(x, w1, b1)
    h = conv(h, w2, b2)
    flat = h.reshape(h.shape[0], -1)
    z = flat @ fw1.T + fb1
    z = z @ fw2.T + fb2
    return jax.nn.log_softmax(z, axis=-1)


if __name__ == "__main__":
    key = jax.random.PRNGKey(0)
    k_param, k_x = jax.random.split(key)
    raw_params = make_params(k_param)
    prep = prepare_params(raw_params)       # hoisted: runs once, not per forward

    x = jax.random.normal(k_x, (B, C_IN, H_IN, W_IN), jnp.float32)

    fwd = jax.jit(cnn_forward)
    out = jax.block_until_ready(fwd(x, prep))

    assert out.shape == (B, NCLS)
    # rows are valid log-probabilities
    assert jnp.allclose(jnp.exp(out).sum(axis=1), 1.0, atol=1e-4)
    # matches a plain-JAX reference of the original PyTorch forward
    ref = reference_forward(x, raw_params)
    assert jnp.allclose(out, ref, atol=1e-3, rtol=1e-3)

    print("KERNEL_OK")
</pallas_src>

<mosaic_0001>
module attributes {stable_mosaic.version = 11 : i64} {
  func.func @_fused_cnn_kernel(%arg0: memref<20x40xf32, #tpu.memory_space<vmem>>, %arg1: memref<40x144xf32, #tpu.memory_space<vmem>>, %arg2: memref<40x144xf32, #tpu.memory_space<vmem>>, %arg3: memref<1x144xf32, #tpu.memory_space<vmem>>, %arg4: memref<144x128xf32, #tpu.memory_space<vmem>>, %arg5: memref<144x128xf32, #tpu.memory_space<vmem>>, %arg6: memref<1x128xf32, #tpu.memory_space<vmem>>, %arg7: memref<1024x8xf32, #tpu.memory_space<vmem>>, %arg8: memref<1x8xf32, #tpu.memory_space<vmem>>, %arg9: memref<2x8xf32, #tpu.memory_space<vmem>>, %arg10: memref<19x144xf32, #tpu.memory_space<vmem>>, %arg11: memref<18x128xf32, #tpu.memory_space<vmem>>, %arg12: memref<2x1024xf32, #tpu.memory_space<vmem>>) attributes {dimension_semantics = [], scalar_prefetch = 0 : i64, scratch_operands = 3 : i64, tpu.core_type = #tpu.core_type<tc>} {
    %c0 = arith.constant 0 : index
    %c0_0 = arith.constant 0 : index
    %0 = vector.load %arg0[%c0, %c0_0] : memref<20x40xf32, #tpu.memory_space<vmem>>, vector<19x40xf32>
    %c0_1 = arith.constant 0 : index
    %c0_2 = arith.constant 0 : index
    %1 = vector.load %arg1[%c0_1, %c0_2] : memref<40x144xf32, #tpu.memory_space<vmem>>, vector<40x144xf32>
    %cst = arith.constant dense<0.000000e+00> : vector<19x144xf32>
    %2 = tpu.matmul %0, %1, %cst {dimension_numbers = #tpu.dot_dimension_numbers<[1], [0], [0], [1], [0, 0, 1, 1], [], []>} : vector<19x40xf32>, vector<40x144xf32>, vector<19x144xf32> -> vector<19x144xf32>
    %c1 = arith.constant 1 : index
    %c0_3 = arith.constant 0 : index
    %3 = vector.load %arg0[%c1, %c0_3] : memref<20x40xf32, #tpu.memory_space<vmem>>, vector<19x40xf32>
    %c0_4 = arith.constant 0 : index
    %c0_5 = arith.constant 0 : index
    %4 = vector.load %arg2[%c0_4, %c0_5] : memref<40x144xf32, #tpu.memory_space<vmem>>, vector<40x144xf32>
    %cst_6 = arith.constant dense<0.000000e+00> : vector<19x144xf32>
    %5 = tpu.matmul %3, %4, %cst_6 {dimension_numbers = #tpu.dot_dimension_numbers<[1], [0], [0], [1], [0, 0, 1, 1], [], []>} : vector<19x40xf32>, vector<40x144xf32>, vector<19x144xf32> -> vector<19x144xf32>
    %6 = arith.addf %2, %5 : vector<19x144xf32>
    %c0_7 = arith.constant 0 : index
    %c0_8 = arith.constant 0 : index
    %7 = vector.load %arg3[%c0_7, %c0_8] : memref<1x144xf32, #tpu.memory_space<vmem>>, vector<1x144xf32>
    %8 = vector.broadcast %7 : vector<1x144xf32> to vector<19x144xf32>
    %9 = arith.addf %6, %8 : vector<19x144xf32>
    %10 = arith.negf %9 : vector<19x144xf32>
    %11 = math.exp %10 : vector<19x144xf32>
    %cst_9 = arith.constant 1.000000e+00 : f32
    %12 = vector.broadcast %cst_9 : f32 to vector<19x144xf32>
    %13 = arith.addf %12, %11 : vector<19x144xf32>
    %14 = arith.divf %12, %13 : vector<19x144xf32>
    %c0_10 = arith.constant 0 : index
    %c0_11 = arith.constant 0 : index
    %15 = vector.load %arg10[%c0_10, %c0_11] : memref<19x144xf32, #tpu.memory_space<vmem>>, vector<19x144xf32>
    tpu.vector_store %arg10[%c0_10, %c0_11], %14 {strides = array<i32>} : memref<19x144xf32, #tpu.memory_space<vmem>>, vector<19x144xf32>,
    %c0_12 = arith.constant 0 : index
    %c0_13 = arith.constant 0 : index
    %16 = vector.load %arg10[%c0_12, %c0_13] : memref<19x144xf32, #tpu.memory_space<vmem>>, vector<18x144xf32>
    %c0_14 = arith.constant 0 : index
    %c0_15 = arith.constant 0 : index
    %17 = vector.load %arg4[%c0_14, %c0_15] : memref<144x128xf32, #tpu.memory_space<vmem>>, vector<144x128xf32>
    %cst_16 = arith.constant dense<0.000000e+00> : vector<18x128xf32>
    %18 = tpu.matmul %16, %17, %cst_16 {dimension_numbers = #tpu.dot_dimension_numbers<[1], [0], [0], [1], [0, 0, 1, 1], [], []>} : vector<18x144xf32>, vector<144x128xf32>, vector<18x128xf32> -> vector<18x128xf32>
    %c1_17 = arith.constant 1 : index
    %c0_18 = arith.constant 0 : index
    %19 = vector.load %arg10[%c1_17, %c0_18] : memref<19x144xf32, #tpu.memory_space<vmem>>, vector<18x144xf32>
    %c0_19 = arith.constant 0 : index
    %c0_20 = arith.constant 0 : index
    %20 = vector.load %arg5[%c0_19, %c0_20] : memref<144x128xf32, #tpu.memory_space<vmem>>, vector<144x128xf32>
    %cst_21 = arith.constant dense<0.000000e+00> : vector<18x128xf32>
    %21 = tpu.matmul %19, %20, %cst_21 {dimension_numbers = #tpu.dot_dimension_numbers<[1], [0], [0], [1], [0, 0, 1, 1], [], []>} : vector<18x144xf32>, vector<144x128xf32>, vector<18x128xf32> -> vector<18x128xf32>
    %22 = arith.addf %18, %21 : vector<18x128xf32>
    %c0_22 = arith.constant 0 : index
    %c0_23 = arith.constant 0 : index
    %23 = vector.load %arg6[%c0_22, %c0_23] : memref<1x128xf32, #tpu.memory_space<vmem>>, vector<1x128xf32>
    %24 = vector.broadcast %23 : vector<1x128xf32> to vector<18x128xf32>
    %25 = arith.addf %22, %24 : vector<18x128xf32>
    %26 = arith.negf %25 : vector<18x128xf32>
    %27 = math.exp %26 : vector<18x128xf32>
    %cst_24 = arith.constant 1.000000e+00 : f32
    %28 = vector.broadcast %cst_24 : f32 to vector<18x128xf32>
    %29 = arith.addf %28, %27 : vector<18x128xf32>
    %30 = arith.divf %28, %29 : vector<18x128xf32>
    %c0_25 = arith.constant 0 : index
    %c0_26 = arith.constant 0 : index
    %31 = vector.load %arg11[%c0_25, %c0_26] : memref<18x128xf32, #tpu.memory_space<vmem>>, vector<18x128xf32>
    tpu.vector_store %arg11[%c0_25, %c0_26], %30 {strides = array<i32>} : memref<18x128xf32, #tpu.memory_space<vmem>>, vector<18x128xf32>,
    %c0_27 = arith.constant 0 : index
    %c0_28 = arith.constant 0 : index
    %32 = vector.load %arg11[%c0_27, %c0_28] : memref<18x128xf32, #tpu.memory_space<vmem>>, vector<1x128xf32>
    %c0_29 = arith.constant 0 : index
    %c0_30 = arith.constant 0 : index
    %33 = vector.load %arg12[%c0_29, %c0_30] : memref<2x1024xf32, #tpu.memory_space<vmem>>, vector<1x128xf32>
    tpu.vector_store %arg12[%c0_29, %c0_30], %32 {strides = array<i32>} : memref<2x1024xf32, #tpu.memory_space<vmem>>, vector<1x128xf32>,
    %c1_31 = arith.constant 1 : index
    %c0_32 = arith.constant 0 : index
    %34 = vector.load %arg11[%c1_31, %c0_32] : memref<18x128xf32, #tpu.memory_space<vmem>>, vector<1x128xf32>
    %c0_33 = arith.constant 0 : index
    %c128 = arith.constant 128 : index
    %35 = vector.load %arg12[%c0_33, %c128] : memref<2x1024xf32, #tpu.memory_space<vmem>>, vector<1x128xf32>
    tpu.vector_store %arg12[%c0_33, %c128], %34 {strides = array<i32>} : memref<2x1024xf32, #tpu.memory_space<vmem>>, vector<1x128xf32>,
    %c2 = arith.constant 2 : index
    %c0_34 = arith.constant 0 : index
    %36 = vector.load %arg11[%c2, %c0_34] : memref<18x128xf32, #tpu.memory_space<vmem>>, vector<1x128xf32>
    %c0_35 = arith.constant 0 : index
    %c256 = arith.constant 256 : index
    %37 = vector.load %arg12[%c0_35, %c256] : memref<2x1024xf32, #tpu.memory_space<vmem>>, vector<1x128xf32>
    tpu.vector_store %arg12[%c0_35, %c256], %36 {strides = array<i32>} : memref<2x1024xf32, #tpu.memory_space<vmem>>, vector<1x128xf32>,
    %c3 = arith.constant 3 : index
    %c0_36 = arith.constant 0 : index
    %38 = vector.load %arg11[%c3, %c0_36] : memref<18x128xf32, #tpu.memory_space<vmem>>, vector<1x128xf32>
    %c0_37 = arith.constant 0 : index
    %c384 = arith.constant 384 : index
    %39 = vector.load %arg12[%c0_37, %c384] : memref<2x1024xf32, #tpu.memory_space<vmem>>, vector<1x128xf32>
    tpu.vector_store %arg12[%c0_37, %c384], %38 {strides = array<i32>} : memref<2x1024xf32, #tpu.memory_space<vmem>>, vector<1x128xf32>,
    %c4 = arith.constant 4 : index
    %c0_38 = arith.constant 0 : index
    %40 = vector.load %arg11[%c4, %c0_38] : memref<18x128xf32, #tpu.memory_space<vmem>>, vector<1x128xf32>
    %c0_39 = arith.constant 0 : index
    %c512 = arith.constant 512 : index
    %41 = vector.load %arg12[%c0_39, %c512] : memref<2x1024xf32, #tpu.memory_space<vmem>>, vector<1x128xf32>
    tpu.vector_store %arg12[%c0_39, %c512], %40 {strides = array<i32>} : memref<2x1024xf32, #tpu.memory_space<vmem>>, vector<1x128xf32>,
    %c5 = arith.constant 5 : index
    %c0_40 = arith.constant 0 : index
    %42 = vector.load %arg11[%c5, %c0_40] : memref<18x128xf32, #tpu.memory_space<vmem>>, vector<1x128xf32>
    %c0_41 = arith.constant 0 : index
    %c640 = arith.constant 640 : index
    %43 = vector.load %arg12[%c0_41, %c640] : memref<2x1024xf32, #tpu.memory_space<vmem>>, vector<1x128xf32>
    tpu.vector_store %arg12[%c0_41, %c640], %42 {strides = array<i32>} : memref<2x1024xf32, #tpu.memory_space<vmem>>, vector<1x128xf32>,
    %c6 = arith.constant 6 : index
    %c0_42 = arith.constant 0 : index
    %44 = vector.load %arg11[%c6, %c0_42] : memref<18x128xf32, #tpu.memory_space<vmem>>, vector<1x128xf32>
    %c0_43 = arith.constant 0 : index
    %c768 = arith.constant 768 : index
    %45 = vector.load %arg12[%c0_43, %c768] : memref<2x1024xf32, #tpu.memory_space<vmem>>, vector<1x128xf32>
    tpu.vector_store %arg12[%c0_43, %c768], %44 {strides = array<i32>} : memref<2x1024xf32, #tpu.memory_space<vmem>>, vector<1x128xf32>,
    %c7 = arith.constant 7 : index
    %c0_44 = arith.constant 0 : index
    %46 = vector.load %arg11[%c7, %c0_44] : memref<18x128xf32, #tpu.memory_space<vmem>>, vector<1x128xf32>
    %c0_45 = arith.constant 0 : index
    %c896 = arith.constant 896 : index
    %47 = vector.load %arg12[%c0_45, %c896] : memref<2x1024xf32, #tpu.memory_space<vmem>>, vector<1x128xf32>
    tpu.vector_store %arg12[%c0_45, %c896], %46 {strides = array<i32>} : memref<2x1024xf32, #tpu.memory_space<vmem>>, vector<1x128xf32>,
    %c10 = arith.constant 10 : index
    %c0_46 = arith.constant 0 : index
    %48 = vector.load %arg11[%c10, %c0_46] : memref<18x128xf32, #tpu.memory_space<vmem>>, vector<1x128xf32>
    %c1_47 = arith.constant 1 : index
    %c0_48 = arith.constant 0 : index
    %49 = vector.load %arg12[%c1_47, %c0_48] : memref<2x1024xf32, #tpu.memory_space<vmem>>, vector<1x128xf32>
    tpu.vector_store %arg12[%c1_47, %c0_48], %48 {strides = array<i32>} : memref<2x1024xf32, #tpu.memory_space<vmem>>, vector<1x128xf32>,
    %c11 = arith.constant 11 : index
    %c0_49 = arith.constant 0 : index
    %50 = vector.load %arg11[%c11, %c0_49] : memref<18x128xf32, #tpu.memory_space<vmem>>, vector<1x128xf32>
    %c1_50 = arith.constant 1 : index
    %c128_51 = arith.constant 128 : index
    %51 = vector.load %arg12[%c1_50, %c128_51] : memref<2x1024xf32, #tpu.memory_space<vmem>>, vector<1x128xf32>
    tpu.vector_store %arg12[%c1_50, %c128_51], %50 {strides = array<i32>} : memref<2x1024xf32, #tpu.memory_space<vmem>>, vector<1x128xf32>,
    %c12 = arith.constant 12 : index
    %c0_52 = arith.constant 0 : index
    %52 = vector.load %arg11[%c12, %c0_52] : memref<18x128xf32, #tpu.memory_space<vmem>>, vector<1x128xf32>
    %c1_53 = arith.constant 1 : index
    %c256_54 = arith.constant 256 : index
    %53 = vector.load %arg12[%c1_53, %c256_54] : memref<2x1024xf32, #tpu.memory_space<vmem>>, vector<1x128xf32>
    tpu.vector_store %arg12[%c1_53, %c256_54], %52 {strides = array<i32>} : memref<2x1024xf32, #tpu.memory_space<vmem>>, vector<1x128xf32>,
    %c13 = arith.constant 13 : index
    %c0_55 = arith.constant 0 : index
    %54 = vector.load %arg11[%c13, %c0_55] : memref<18x128xf32, #tpu.memory_space<vmem>>, vector<1x128xf32>
    %c1_56 = arith.constant 1 : index
    %c384_57 = arith.constant 384 : index
    %55 = vector.load %arg12[%c1_56, %c384_57] : memref<2x1024xf32, #tpu.memory_space<vmem>>, vector<1x128xf32>
    tpu.vector_store %arg12[%c1_56, %c384_57], %54 {strides = array<i32>} : memref<2x1024xf32, #tpu.memory_space<vmem>>, vector<1x128xf32>,
    %c14 = arith.constant 14 : index
    %c0_58 = arith.constant 0 : index
    %56 = vector.load %arg11[%c14, %c0_58] : memref<18x128xf32, #tpu.memory_space<vmem>>, vector<1x128xf32>
    %c1_59 = arith.constant 1 : index
    %c512_60 = arith.constant 512 : index
    %57 = vector.load %arg12[%c1_59, %c512_60] : memref<2x1024xf32, #tpu.memory_space<vmem>>, vector<1x128xf32>
    tpu.vector_store %arg12[%c1_59, %c512_60], %56 {strides = array<i32>} : memref<2x1024xf32, #tpu.memory_space<vmem>>, vector<1x128xf32>,
    %c15 = arith.constant 15 : index
    %c0_61 = arith.constant 0 : index
    %58 = vector.load %arg11[%c15, %c0_61] : memref<18x128xf32, #tpu.memory_space<vmem>>, vector<1x128xf32>
    %c1_62 = arith.constant 1 : index
    %c640_63 = arith.constant 640 : index
    %59 = vector.load %arg12[%c1_62, %c640_63] : memref<2x1024xf32, #tpu.memory_space<vmem>>, vector<1x128xf32>
    tpu.vector_store %arg12[%c1_62, %c640_63], %58 {strides = array<i32>} : memref<2x1024xf32, #tpu.memory_space<vmem>>, vector<1x128xf32>,
    %c16 = arith.constant 16 : index
    %c0_64 = arith.constant 0 : index
    %60 = vector.load %arg11[%c16, %c0_64] : memref<18x128xf32, #tpu.memory_space<vmem>>, vector<1x128xf32>
    %c1_65 = arith.constant 1 : index
    %c768_66 = arith.constant 768 : index
    %61 = vector.load %arg12[%c1_65, %c768_66] : memref<2x1024xf32, #tpu.memory_space<vmem>>, vector<1x128xf32>
    tpu.vector_store %arg12[%c1_65, %c768_66], %60 {strides = array<i32>} : memref<2x1024xf32, #tpu.memory_space<vmem>>, vector<1x128xf32>,
    %c17 = arith.constant 17 : index
    %c0_67 = arith.constant 0 : index
    %62 = vector.load %arg11[%c17, %c0_67] : memref<18x128xf32, #tpu.memory_space<vmem>>, vector<1x128xf32>
    %c1_68 = arith.constant 1 : index
    %c896_69 = arith.constant 896 : index
    %63 = vector.load %arg12[%c1_68, %c896_69] : memref<2x1024xf32, #tpu.memory_space<vmem>>, vector<1x128xf32>
    tpu.vector_store %arg12[%c1_68, %c896_69], %62 {strides = array<i32>} : memref<2x1024xf32, #tpu.memory_space<vmem>>, vector<1x128xf32>,
    %c0_70 = arith.constant 0 : index
    %c0_71 = arith.constant 0 : index
    %64 = vector.load %arg12[%c0_70, %c0_71] : memref<2x1024xf32, #tpu.memory_space<vmem>>, vector<2x1024xf32>
    %c0_72 = arith.constant 0 : index
    %c0_73 = arith.constant 0 : index
    %65 = vector.load %arg7[%c0_72, %c0_73] : memref<1024x8xf32, #tpu.memory_space<vmem>>, vector<1024x8xf32>
    %cst_74 = arith.constant dense<0.000000e+00> : vector<2x8xf32>
    %66 = tpu.matmul %64, %65, %cst_74 {dimension_numbers = #tpu.dot_dimension_numbers<[1], [0], [0], [1], [0, 0, 1, 1], [], []>} : vector<2x1024xf32>, vector<1024x8xf32>, vector<2x8xf32> -> vector<2x8xf32>
    %c0_75 = arith.constant 0 : index
    %c0_76 = arith.constant 0 : index
    %67 = vector.load %arg8[%c0_75, %c0_76] : memref<1x8xf32, #tpu.memory_space<vmem>>, vector<1x8xf32>
    %68 = vector.broadcast %67 : vector<1x8xf32> to vector<2x8xf32>
    %69 = arith.addf %66, %68 : vector<2x8xf32>
    %cst_77 = arith.constant dense<0xFF800000> : vector<2xf32>
    %70 = vector.multi_reduction <maximumf>, %69, %cst_77 [1] : vector<2x8xf32> to vector<2xf32>
    %71 = vector.shape_cast %70 : vector<2xf32> to vector<2x1xf32>
    %72 = vector.broadcast %71 : vector<2x1xf32> to vector<2x8xf32>
    %73 = arith.subf %69, %72 : vector<2x8xf32>
    %74 = math.exp %73 : vector<2x8xf32>
    %cst_78 = arith.constant dense<0.000000e+00> : vector<2xf32>
    %75 = vector.multi_reduction <add>, %74, %cst_78 [1] : vector<2x8xf32> to vector<2xf32>
    %76 = vector.shape_cast %75 : vector<2xf32> to vector<2x1xf32>
    %77 = math.log %76 : vector<2x1xf32>
    %78 = arith.addf %77, %71 : vector<2x1xf32>
    %79 = vector.broadcast %78 : vector<2x1xf32> to vector<2x8xf32>
    %80 = arith.subf %69, %79 : vector<2x8xf32>
    %c0_79 = arith.constant 0 : index
    %c0_80 = arith.constant 0 : index
    %81 = vector.load %arg9[%c0_79, %c0_80] : memref<2x8xf32, #tpu.memory_space<vmem>>, vector<2x8xf32>
    tpu.vector_store %arg9[%c0_79, %c0_80], %80 {strides = array<i32>} : memref<2x8xf32, #tpu.memory_space<vmem>>, vector<2x8xf32>,
    return
  }
}

</mosaic_0001>

<bundles_post_ra>
// kernel: cnn_forward.1
= control target key start
LH: loop header
LB: loop body
LE: loop exit
PB: predicated region body
PF: predicated region fallthrough
CT: control target
= control target key end

     0   :  { %v1536_v7 = vmov 0.0   ;;  %s2235_s0 = inlined_call_operand.vmem [shape: f32[20,40], index: 0, kind: input, shape index: {}]   ;;  %s2236_s1 = inlined_call_operand.vmem [shape: f32[40,144], index: 1, kind: input, shape index: {}]   ;;  %s2237_s2 = inlined_call_operand.vmem [shape: f32[40,144], index: 2, kind: input, shape index: {}]   ;;  %s2238_s3 = inlined_call_operand.vmem [shape: f32[1,144], index: 3, kind: input, shape index: {}]   ;;  %s2239_s4 = inlined_call_operand.vmem [shape: f32[144,128], index: 4, kind: input, shape index: {}]   ;;  %s2240_s5 = inlined_call_operand.vmem [shape: f32[144,128], index: 5, kind: input, shape index: {}]   ;;  %s2241_s6 = inlined_call_operand.vmem [shape: f32[1,128], index: 6, kind: input, shape index: {}]   ;;  %s2242_s7 = inlined_call_operand.vmem [shape: f32[1024,8], index: 7, kind: input, shape index: {}]   ;;  %s2243_s8 = inlined_call_operand.vmem [shape: f32[1,8], index: 8, kind: input, shape index: {}]   ;;  %s2244_s9 = inlined_call_operand.hbm [shape: f32[2,8], index: 9, kind: output, shape index: {}]  }
   0x1   :  { %v50_v0 = vld [vmem:[%s2237_s2 + $0x8] sm:$0xff]  ;;  %v52_v1 = vld [vmem:[%s2237_s2 + $0x18] sm:$0xff]  ;;  %v49_v5 = vld [vmem:[%s2237_s2] sm:$0xff]  ;;  %133 = vmatprep.mubr.f32.mxu1 %v1536_v7  ;;  %225 = vmatprep.mubr.f32.mxu0 %v1536_v7 }
   0x2   :  { %v37_v2 = vld [vmem:[%s2236_s1 + $0x8] sm:$0xff]  ;;  %v1262_v3 = vpack.c.bf16 %v52_v1, %v50_v0  ;;  %v39_v4 = vld [vmem:[%s2236_s1 + $0x18] sm:$0xff]  ;;  %v51_v6 = vld [vmem:[%s2237_s2 + $0x10] sm:$0xff] }
   0x3   :  { %v1270_v8 = vpack.c.bf16 %v39_v4, %v37_v2  ;;  %v1264_v9 = vpack.c.bf16 %v51_v6, %v49_v5  ;;  %v36_v10 = vld [vmem:[%s2236_s1] sm:$0xff]  ;;  %v38_v11 = vld [vmem:[%s2236_s1 + $0x10] sm:$0xff]  ;;  %v54_v12 = vld [vmem:[%s2237_s2 + $0x28] sm:$0xff] }
   0x4   :  { %1263 = vmatprep.subr.bf16.mxu1 %v1262_v3  ;;  %v1272_v13 = vpack.c.bf16 %v38_v11, %v36_v10  ;;  %v56_v14 = vld [vmem:[%s2237_s2 + $0x38] sm:$0xff]  ;;  %v41_v15 = vld [vmem:[%s2236_s1 + $0x28] sm:$0xff]  ;;  %v53_v19 = vld [vmem:[%s2237_s2 + $0x20] sm:$0xff] }
   0x5   :  { %v43_v16 = vld [vmem:[%s2236_s1 + $0x38] sm:$0xff]  ;;  %1271 = vmatprep.subr.bf16.mxu0 %v1270_v8  ;;  %1265 = vmatpush1.bf16.msra.mxu1 %v1264_v9  ;;  %v1266_v17 = vpack.c.bf16 %v56_v14, %v54_v12  ;;  %v55_v20 = vld [vmem:[%s2237_s2 + $0x30] sm:$0xff]  ;;  %v40_v21 = vld [vmem:[%s2236_s1 + $0x20] sm:$0xff] }
   0x6   :  { %v1274_v18 = vpack.c.bf16 %v43_v16, %v41_v15  ;;  %1273 = vmatpush1.bf16.msra.mxu0 %v1272_v13  ;;  %v1268_v22 = vpack.c.bf16 %v55_v20, %v53_v19  ;;  %v42_v23 = vld [vmem:[%s2236_s1 + $0x30] sm:$0xff]  ;;  %v58_v25 = vld [vmem:[%s2237_s2 + $0x48] sm:$0xff] }
   0x7   :  { %1267 = vmatprep.subr.bf16.mxu1 %v1266_v17  ;;  %v1276_v24 = vpack.c.bf16 %v42_v23, %v40_v21  ;;  %v45_v26 = vld [vmem:[%s2236_s1 + $0x48] sm:$0xff] }
   0x8   :  { %1275 = vmatprep.subr.bf16.mxu0 %v1274_v18 }
   0x9   :  { %1269 = vmatpush1.bf16.msra.mxu1 %v1268_v22 }
   0xa   :  { %14 = vsyncpa [#allocation6], 0  ;;  %1277 = vmatpush1.bf16.msra.mxu0 %v1276_v24  ;;  %77 = vmatprep.subr.mxu1 %v58_v25  ;;  %v57_v27 = vld [vmem:[%s2237_s2 + $0x40] sm:$0xff]  ;;  %vm59_vm0 = vcmask 326656   ;;  %v47_v31 = vld [vmem:[%s2235_s0 + $0x9] sm:$0xff]  ;;  %v1537_v38 = vmov 0.0|0.0  }
   0xb   :  { %169 = vmatprep.subr.mxu0 %v45_v26  ;;  %v44_v28 = vld [vmem:[%s2236_s1 + $0x40] sm:$0xff]  ;;  %v34_v32 = vld [vmem:[%s2235_s0 + $0x8] sm:$0xff]  ;;  %v48_v33 = vld [vmem:[%s2235_s0 + $0x11] sm:$0x7]  ;;  %v246_v26 = vlaneseq  ;;  %vm299_vm1 = vcmask 130048   ;;  %vm304_vm2 = vcmask 124928  }
   0xc   :  { %v46_v29 = vld [vmem:[%s2235_s0 + $0x1] sm:$0xff]  ;;  %v35_v34 = vld [vmem:[%s2235_s0 + $0x10] sm:$0x7]  ;;  %v315_v40 = vld [vmem:[%s2239_s4 + $0x18] sm:$0xff]  ;;  %vm358_vm3 = vcmask 1046528   ;;  %vm1070_vm4 = vcmask 58368  }
   0xd   :  { %v33_v30 = vld [vmem:[%s2235_s0] sm:$0xff]  ;;  %78 = vmatpush1.msra.mxu1 %v57_v27  ;;  %v313_v36 = vld [vmem:[%s2239_s4 + $0x8] sm:$0xff]  ;;  %v314_v39 = vld [vmem:[%s2239_s4 + $0x10] sm:$0xff]  ;;  %v1800_v27 = vshrl.u32 %v246_v26, 7 }
   0xe   :  { %170 = vmatpush1.msra.mxu0 %v44_v28  ;;  %1099 = vmatmul.mubr.msk.f32.vlgmr.msra.gmra.mrb[0].mxu1 %vm59_vm0, %v46_v29  ;;  %v312_v35 = vld [vmem:[%s2239_s4] sm:$0xff]  ;;  %v1309_v41 = vpack.c.bf16 %v315_v40, %v314_v39  ;;  %v335_v43 = vld [vmem:[%s2240_s5 + $0x8] sm:$0xff]  ;;  %v336_v48 = vld [vmem:[%s2240_s5 + $0x10] sm:$0xff] }
   0xf   :  { %1102 = vmatmul.mubr.msk.f32.vlgmr.msra.gmra.mrb[0].mxu0 %vm59_vm0, %v33_v30  ;;  %139 = vmatprep.mubr.f32.mxu1 %v1536_v7  ;;  %v1306_v37 = vpack.c.bf16 %v313_v36, %v312_v35  ;;  %v334_v42 = vld [vmem:[%s2240_s5] sm:$0xff]  ;;  %v317_v46 = vld [vmem:[%s2239_s4 + $0x28] sm:$0xff]  ;;  %v337_v49 = vld [vmem:[%s2240_s5 + $0x18] sm:$0xff]  ;;  %v248_v28 = vsub.s32 0, %v1800_v27  ;;  %v252_v30 = vsub.s32 1, %v1800_v27 }
  0x10   :  { %231 = vmatprep.mubr.f32.mxu0 %v1536_v7  ;;  %1305 = vmatprep.subr.bf16.mxu0 %v1537_v38  ;;  %v1279_v44 = vpack.c.bf16 %v335_v43, %v334_v42  ;;  %v316_v45 = vld [vmem:[%s2239_s4 + $0x20] sm:$0xff]  ;;  %v1282_v50 = vpack.c.bf16 %v337_v49, %v336_v48  ;;  %v318_v51 = vld [vmem:[%s2239_s4 + $0x30] sm:$0xff]  ;;  %v319_v52 = vld [vmem:[%s2239_s4 + $0x38] sm:$0xff] }
  0x11   :  { %1278 = vmatprep.subr.bf16.mxu1 %v1537_v38  ;;  %1307 = vmatpush1.bf16.msra.mxu0 %v1306_v37  ;;  %v1312_v47 = vpack.c.bf16 %v317_v46, %v316_v45  ;;  %v1315_v53 = vpack.c.bf16 %v319_v52, %v318_v51  ;;  %v338_v54 = vld [vmem:[%s2240_s5 + $0x20] sm:$0xff]  ;;  %v339_v55 = vld [vmem:[%s2240_s5 + $0x28] sm:$0xff]  ;;  %v340_v60 = vld [vmem:[%s2240_s5 + $0x30] sm:$0xff] }
  0x12   :  { %1100 = vmatmul.mubr.msk.f32.gmra.mrb[2].mxu1 %vm59_vm0, %v47_v31  ;;  %1308 = vmatprep.subr.bf16.mxu0 %v1537_v38  ;;  %v1285_v56 = vpack.c.bf16 %v339_v55, %v338_v54  ;;  %v320_v57 = vld [vmem:[%s2239_s4 + $0x40] sm:$0xff]  ;;  %v321_v58 = vld [vmem:[%s2239_s4 + $0x48] sm:$0xff]  ;;  %v341_v61 = vld [vmem:[%s2240_s5 + $0x38] sm:$0xff] }
  0x13   :  { %1103 = vmatmul.mubr.msk.f32.gmra.mrb[2].mxu0 %vm59_vm0, %v34_v32  ;;  %145 = vmatprep.mubr.f32.mxu1 %v1536_v7  ;;  %v1318_v59 = vpack.c.bf16 %v321_v58, %v320_v57  ;;  %v1288_v62 = vpack.c.bf16 %v341_v61, %v340_v60  ;;  %v322_v63 = vld [vmem:[%s2239_s4 + $0x50] sm:$0xff]  ;;  %v323_v0 = vld [vmem:[%s2239_s4 + $0x58] sm:$0xff]  ;;  %v342_v2 = vld [vmem:[%s2240_s5 + $0x40] sm:$0xff] }
  0x14   :  { %237 = vmatprep.mubr.f32.mxu0 %v1536_v7  ;;  %1280 = vmatpush1.bf16.msra.mxu1 %v1279_v44  ;;  %v1321_v1 = vpack.c.bf16 %v323_v0, %v322_v63  ;;  %v343_v3 = vld [vmem:[%s2240_s5 + $0x48] sm:$0xff]  ;;  %v324_v5 = vld [vmem:[%s2239_s4 + $0x60] sm:$0xff]  ;;  %v344_v8 = vld [vmem:[%s2240_s5 + $0x50] sm:$0xff] }
  0x15   :  { %1310 = vmatpush1.bf16.msra.mxu0 %v1309_v41  ;;  %1281 = vmatprep.subr.bf16.mxu1 %v1537_v38  ;;  %v1291_v4 = vpack.c.bf16 %v343_v3, %v342_v2  ;;  %v325_v6 = vld [vmem:[%s2239_s4 + $0x68] sm:$0xff]  ;;  %v345_v9 = vld [vmem:[%s2240_s5 + $0x58] sm:$0xff]  ;;  %v326_v11 = vld [vmem:[%s2239_s4 + $0x70] sm:$0xff] }
  0x16   :  { %1101 = vmatmul.mubr.msk.f32.gmra.mrb[4].mxu1 %vm59_vm0, %v48_v33  ;;  %1311 = vmatprep.subr.bf16.mxu0 %v1537_v38  ;;  %v1324_v7 = vpack.c.bf16 %v325_v6, %v324_v5  ;;  %v1294_v10 = vpack.c.bf16 %v345_v9, %v344_v8  ;;  %v327_v12 = vld [vmem:[%s2239_s4 + $0x78] sm:$0xff]  ;;  %v346_v14 = vld [vmem:[%s2240_s5 + $0x60] sm:$0xff]  ;;  %v347_v15 = vld [vmem:[%s2240_s5 + $0x68] sm:$0xff] }
  0x17   :  { %1104 = vmatmul.mubr.msk.f32.gmra.mrb[4].mxu0 %vm59_vm0, %v35_v34  ;;  %v1327_v13 = vpack.c.bf16 %v327_v12, %v326_v11  ;;  %v1297_v16 = vpack.c.bf16 %v347_v15, %v346_v14  ;;  %v328_v17 = vld [vmem:[%s2239_s4 + $0x80] sm:$0xff]  ;;  %v329_v18 = vld [vmem:[%s2239_s4 + $0x88] sm:$0xff]  ;;  %v348_v20 = vld [vmem:[%s2240_s5 + $0x70] sm:$0xff] }
  0x18   :  { %1283 = vmatpush1.bf16.msra.mxu1 %v1282_v50  ;;  %v1330_v19 = vpack.c.bf16 %v329_v18, %v328_v17  ;;  %v349_v21 = vld [vmem:[%s2240_s5 + $0x78] sm:$0xff]  ;;  %v350_v23 = vld [vmem:[%s2240_s5 + $0x80] sm:$0xff]  ;;  %v351_v24 = vld [vmem:[%s2240_s5 + $0x88] sm:$0xff] }
  0x19   :  { %1313 = vmatpush1.bf16.msra.mxu0 %v1312_v47  ;;  %1284 = vmatprep.subr.bf16.mxu1 %v1537_v38  ;;  %v1300_v22 = vpack.c.bf16 %v349_v21, %v348_v20  ;;  %v1303_v25 = vpack.c.bf16 %v351_v24, %v350_v23  ;;  %v244_v29 = vld [vmem:[%s2238_s3] sm:$0x3] }
  0x1a   :  { %1314 = vmatprep.subr.bf16.mxu0 %v1537_v38  ;;  %v249_v32 = vrot.slane %v244_v29, %v248_v28  ;;  %v253_v35 = vrot.slane %v244_v29, %v252_v30 }
  0x1c   :  { %1286 = vmatpush1.bf16.msra.mxu1 %v1285_v56 }
  0x1d   :  { %1316 = vmatpush1.bf16.msra.mxu0 %v1315_v53  ;;  %1287 = vmatprep.subr.bf16.mxu1 %v1537_v38 }
  0x1e   :  { %1317 = vmatprep.subr.bf16.mxu0 %v1537_v38 }
  0x20   :  { %1289 = vmatpush1.bf16.msra.mxu1 %v1288_v62 }
  0x21   :  { %1319 = vmatpush1.bf16.msra.mxu0 %v1318_v59  ;;  %1290 = vmatprep.subr.bf16.mxu1 %v1537_v38 }
  0x22   :  { %1320 = vmatprep.subr.bf16.mxu0 %v1537_v38 }
  0x24   :  { %1292 = vmatpush1.bf16.msra.mxu1 %v1291_v4 }
  0x25   :  { %1322 = vmatpush1.bf16.msra.mxu0 %v1321_v1  ;;  %1293 = vmatprep.subr.bf16.mxu1 %v1537_v38 }
  0x26   :  { %1323 = vmatprep.subr.bf16.mxu0 %v1537_v38 }
  0x28   :  { %1295 = vmatpush1.bf16.msra.mxu1 %v1294_v10 }
  0x29   :  { %1325 = vmatpush1.bf16.msra.mxu0 %v1324_v7  ;;  %1296 = vmatprep.subr.bf16.mxu1 %v1537_v38 }
  0x2a   :  { %1326 = vmatprep.subr.bf16.mxu0 %v1537_v38 }
  0x2c   :  { %1298 = vmatpush1.bf16.msra.mxu1 %v1297_v16 }
  0x2d   :  { %1328 = vmatpush1.bf16.msra.mxu0 %v1327_v13  ;;  %1299 = vmatprep.subr.bf16.mxu1 %v1537_v38 }
  0x2e   :  { %1329 = vmatprep.subr.bf16.mxu0 %v1537_v38 }
  0x30   :  { %1301 = vmatpush1.bf16.msra.mxu1 %v1300_v22 }
  0x31   :  { %1331 = vmatpush1.bf16.msra.mxu0 %v1330_v19  ;;  %1302 = vmatprep.subr.bf16.mxu1 %v1537_v38 }
  0x34   :  { %1304 = vmatpush1.bf16.msra.mxu1 %v1303_v25 }
  0xe1   :  { %v135_v31 = vpop.f32.mrb[0].mxu1 }
  0xe2   :  { %v227_v33 = vpop.f32.mrb[0].mxu0  ;;  %v137_v34 = vpop.f32.mrb[1].mxu1 }
  0xe3   :  { %v228_v36 = vadd.f32 %v227_v33, %v135_v31  ;;  %v229_v37 = vpop.f32.mrb[1].mxu0 }
  0xe4   :  { %v230_v38 = vadd.f32 %v229_v37, %v137_v34  ;;  %v628_v37 = vld [vmem:[%s2242_s7 + $0x88] sm:$0xff] }
  0xe5   :  { %v256_v39 = vadd.f32 %v249_v32, %v228_v36  ;;  %v141_v40 = vpop.f32.mrb[2].mxu1  ;;  %v627_v36 = vld [vmem:[%s2242_s7 + $0x80] sm:$0xff] }
  0xe6   :  { %v257_v41 = vadd.f32 %v253_v35, %v230_v38  ;;  %v233_v42 = vpop.f32.mrb[2].mxu0  ;;  %v143_v43 = vpop.f32.mrb[3].mxu1  ;;  %v1332_v38 = vpack.c.bf16 %v628_v37, %v627_v36  ;;  %v622_v36 = vld [vmem:[%s2242_s7 + $0x58] sm:$0xff] }
  0xe7   :  { %v1105_v44 = vmul.f32 -1.442695, %v256_v39  ;;  %v234_v45 = vadd.f32 %v233_v42, %v141_v40  ;;  %v235_v46 = vpop.f32.mrb[3].mxu0  ;;  %v611_v39 = vld [vmem:[%s2242_s7] sm:$0xff]  ;;  %v612_v40 = vld [vmem:[%s2242_s7 + $0x8] sm:$0xff] }
  0xe8   :  { %v1106_v47 = vmul.f32 -1.442695, %v257_v41  ;;  %v236_v48 = vadd.f32 %v235_v46, %v143_v43  ;;  %v1334_v41 = vpack.c.bf16 %v612_v40, %v611_v39  ;;  %v659_v42 = vld [vmem:[%s2242_s7 + $0x180] sm:$0xff]  ;;  %v660_v43 = vld [vmem:[%s2242_s7 + $0x188] sm:$0xff]  ;;  %1333 = vmatprep.subr.bf16.mxu1 %v1332_v38  ;;  %v669_v39 = vld [vmem:[%s2242_s7 + $0x1d0] sm:$0xff] }
  0xe9   :  { %1472 = vpow2.f32 %v1105_v44  ;;  %v258_v49 = vadd.f32 %v249_v32, %v234_v45  ;;  %v147_v50 = vpop.f32.mrb[4].mxu1  ;;  %v1364_v44 = vpack.c.bf16 %v660_v43, %v659_v42  ;;  %v643_v45 = vld [vmem:[%s2242_s7 + $0x100] sm:$0xff]  ;;  %v644_v46 = vld [vmem:[%s2242_s7 + $0x108] sm:$0xff]  ;;  %v670_v40 = vld [vmem:[%s2242_s7 + $0x1d8] sm:$0xff] }
  0xea   :  { %1474 = vpow2.f32 %v1106_v47  ;;  %v259_v51 = vadd.f32 %v253_v35, %v236_v48  ;;  %v239_v52 = vpop.f32.mrb[4].mxu0  ;;  %v149_v53 = vpop.f32.mrb[5].mxu1  ;;  %v1366_v47 = vpack.c.bf16 %v644_v46, %v643_v45  ;;  %v629_v48 = vld [vmem:[%s2242_s7 + $0x90] sm:$0xff]  ;;  %v1384_v42 = vpack.c.bf16 %v670_v40, %v669_v39  ;;  %v654_v43 = vld [vmem:[%s2242_s7 + $0x158] sm:$0xff]  ;;  %v640_v45 = vld [vmem:[%s2242_s7 + $0xe8] sm:$0xff] }
  0xeb   :  { %v1107_v54 = vmul.f32 -1.442695, %v258_v49  ;;  %v240_v55 = vadd.f32 %v239_v52, %v147_v50  ;;  %v241_v56 = vpop.f32.mrb[5].mxu0  ;;  %v630_v49 = vld [vmem:[%s2242_s7 + $0x98] sm:$0xff]  ;;  %1365 = vmatprep.subr.bf16.mxu0 %v1364_v44  ;;  %v639_v44 = vld [vmem:[%s2242_s7 + $0xe0] sm:$0xff] }
  0xec   :  { %v1108_v57 = vmul.f32 -1.442695, %v259_v51  ;;  %v242_v58 = vadd.f32 %v241_v56, %v149_v53  ;;  %v1336_v50 = vpack.c.bf16 %v630_v49, %v629_v48  ;;  %v613_v51 = vld [vmem:[%s2242_s7 + $0x10] sm:$0xff]  ;;  %v614_v52 = vld [vmem:[%s2242_s7 + $0x18] sm:$0xff]  ;;  %v623_v48 = vld [vmem:[%s2242_s7 + $0x60] sm:$0xff] }
  0xed   :  { %1476 = vpow2.f32 %v1107_v54  ;;  %v260_v59 = vadd.f32 %v249_v32, %v240_v55  ;;  %v1338_v53 = vpack.c.bf16 %v614_v52, %v613_v51  ;;  %v661_v54 = vld [vmem:[%s2242_s7 + $0x190] sm:$0xff]  ;;  %v662_v55 = vld [vmem:[%s2242_s7 + $0x198] sm:$0xff]  ;;  %v624_v49 = vld [vmem:[%s2242_s7 + $0x68] sm:$0xff] }
  0xee   :  { %1478 = vpow2.f32 %v1108_v57  ;;  %v261_v60 = vadd.f32 %v253_v35, %v242_v58  ;;  %v1368_v56 = vpack.c.bf16 %v662_v55, %v661_v54  ;;  %v645_v57 = vld [vmem:[%s2242_s7 + $0x110] sm:$0xff]  ;;  %v646_v58 = vld [vmem:[%s2242_s7 + $0x118] sm:$0xff]  ;;  %v1358_v51 = vpack.c.bf16 %v624_v49, %v623_v48  ;;  %v672_v52 = vld [vmem:[%s2242_s7 + $0x1e8] sm:$0xff] }
  0xef   :  { %v1109_v61 = vmul.f32 -1.442695, %v260_v59  ;;  %v1370_v59 = vpack.c.bf16 %v646_v58, %v645_v57  ;;  %v656_v54 = vld [vmem:[%s2242_s7 + $0x168] sm:$0xff]  ;;  %v642_v57 = vld [vmem:[%s2242_s7 + $0xf8] sm:$0xff]  ;;  %v625_v58 = vld [vmem:[%s2242_s7 + $0x70] sm:$0xff] }
  0xf0   :  { %v1110_v62 = vmul.f32 -1.442695, %v261_v60  ;;  %v631_v60 = vld [vmem:[%s2242_s7 + $0xa0] sm:$0xff]  ;;  %v1538_v49 = vmov 1983009808  }
  0xf1   :  { %1480 = vpow2.f32 %v1109_v61  ;;  %v632_v61 = vld [vmem:[%s2242_s7 + $0xa8] sm:$0xff] }
  0xf2   :  { %1482 = vpow2.f32 %v1110_v62  ;;  %v1340_v62 = vpack.c.bf16 %v632_v61, %v631_v60  ;;  %v626_v61 = vld [vmem:[%s2242_s7 + $0x78] sm:$0xff] }
  0xf3   :  { %v1473_v63 = vpop.eup %1472 }
  0xf4   :  { %v1475_v0 = vpop.eup %1474  ;;  %v280_v1 = vadd.f32 1.0, %v1473_v63  ;;  %v615_v63 = vld [vmem:[%s2242_s7 + $0x20] sm:$0xff] }
  0xf5   :  { %v281_v2 = vadd.f32 1.0, %v1475_v0  ;;  %v616_v0 = vld [vmem:[%s2242_s7 + $0x28] sm:$0xff] }
  0xf6   :  { %1484 = vrcp.f32 %v280_v1  ;;  %v1342_v1 = vpack.c.bf16 %v616_v0, %v615_v63  ;;  %v674_v63 = vld [vmem:[%s2242_s7 + $0x1f8] sm:$0xff] }
  0xf7   :  { %v1477_v3 = vpop.eup %1476  ;;  %1486 = vrcp.f32 %v281_v2  ;;  %v663_v2 = vld [vmem:[%s2242_s7 + $0x1a0] sm:$0xff] }
  0xf8   :  { %v1479_v4 = vpop.eup %1478  ;;  %v282_v5 = vadd.f32 1.0, %v1477_v3  ;;  %v664_v3 = vld [vmem:[%s2242_s7 + $0x1a8] sm:$0xff] }
  0xf9   :  { %v283_v6 = vadd.f32 1.0, %v1479_v4  ;;  %v1372_v4 = vpack.c.bf16 %v664_v3, %v663_v2  ;;  %v658_v2 = vld [vmem:[%s2242_s7 + $0x178] sm:$0xff]  ;;  %v1362_v3 = vpack.c.bf16 %v626_v61, %v625_v58 }
  0xfa   :  { %1488 = vrcp.f32 %v282_v5  ;;  %v647_v5 = vld [vmem:[%s2242_s7 + $0x120] sm:$0xff] }
  0xfb   :  { %v1481_v7 = vpop.eup %1480  ;;  %1490 = vrcp.f32 %v283_v6  ;;  %v648_v6 = vld [vmem:[%s2242_s7 + $0x128] sm:$0xff] }
  0xfc   :  { %v1483_v8 = vpop.eup %1482  ;;  %v284_v9 = vadd.f32 1.0, %v1481_v7  ;;  %v1374_v7 = vpack.c.bf16 %v648_v6, %v647_v5  ;;  %v691_v5 = vld [vmem:[%s2242_s7 + $0x280] sm:$0xff]  ;;  %v692_v6 = vld [vmem:[%s2242_s7 + $0x288] sm:$0xff] }
  0xfd   :  { %v285_v10 = vadd.f32 1.0, %v1483_v8  ;;  %v633_v8 = vld [vmem:[%s2242_s7 + $0xb0] sm:$0xff] }
  0xfe   :  { %1492 = vrcp.f32 %v284_v9  ;;  %v634_v9 = vld [vmem:[%s2242_s7 + $0xb8] sm:$0xff] }
  0xff   :  { %1494 = vrcp.f32 %v285_v10  ;;  %v1344_v10 = vpack.c.bf16 %v634_v9, %v633_v8  ;;  %v723_v8 = vld [vmem:[%s2242_s7 + $0x380] sm:$0xff]  ;;  %v724_v9 = vld [vmem:[%s2242_s7 + $0x388] sm:$0xff] }
 0x100   :  { %v1485_v11 = vpop.eup %1484 }
 0x101   :  { %v1487_v12 = vpop.eup %1486  ;;  %298 = vst [vmem:[#allocation2] sm:$0xff] %v1485_v11 }
 0x102   :  { %300 = vst.msk [vmem:[#allocation2 + $0x8] sm:$0xff] %vm299_vm1, %v1487_v12  ;;  %v618_v12 = vld [vmem:[%s2242_s7 + $0x38] sm:$0xff] }
 0x104   :  { %v1489_v13 = vpop.eup %1488 }
 0x105   :  { %v1491_v14 = vpop.eup %1490  ;;  %v360_v24 = vrot.slane %v1489_v13, 1 }
 0x106   :  { %302 = vst.msk [vmem:[#allocation2 + $0x18] sm:$0xff] %vm299_vm1, %v1491_v14  ;;  %v665_v14 = vld [vmem:[%s2242_s7 + $0x1b0] sm:$0xff] }
 0x108   :  { %v1493_v15 = vpop.eup %1492  ;;  %v330_v18 = vld [vmem:[#allocation2] sm:$0xfe] }
 0x109   :  { %v1495_v16 = vpop.eup %1494  ;;  %303 = vst [vmem:[#allocation2 + $0x20] sm:$0x7] %v1493_v15  ;;  %v307_v17 = vld [vmem:[#allocation2 + $0x8] sm:$0xff]  ;;  %v359_v21 = vrot.slane %v330_v18, 1  ;;  %v666_v15 = vld [vmem:[%s2242_s7 + $0x1b8] sm:$0xff] }
 0x10a   :  { %305 = vst.msk [vmem:[#allocation2 + $0x28] sm:$0x7] %vm304_vm2, %v1495_v16  ;;  %1114 = vmatprep.mubr.msk.f32.mxu0 %vm299_vm1, %v307_v17  ;;  %v331_v19 = vld [vmem:[#allocation2 + $0x8] sm:$0xfe]  ;;  %v1376_v16 = vpack.c.bf16 %v666_v15, %v665_v14  ;;  %v649_v17 = vld [vmem:[%s2242_s7 + $0x130] sm:$0xff]  ;;  %v650_v18 = vld [vmem:[%s2242_s7 + $0x138] sm:$0xff] }
 0x10b   :  { %531 = vmatmul.mubr.f32.vlgmr.msra.gmra.mrb[6].mxu0 %v1485_v11  ;;  %v362_v23 = vrot.slane %v331_v19, 1  ;;  %v361_v28 = vsel %vm358_vm3, %v359_v21, %v360_v24  ;;  %v617_v11 = vld [vmem:[%s2242_s7 + $0x30] sm:$0xff]  ;;  %v1378_v19 = vpack.c.bf16 %v650_v18, %v649_v17  ;;  %v636_v21 = vld [vmem:[%s2242_s7 + $0xc8] sm:$0xff] }
 0x10c   :  { %1367 = vmatpush3.bf16.msra.mxu0 %v1366_v47  ;;  %v1356_v47 = vpack.c.bf16 %v640_v45, %v639_v44 }
 0x10d   :  { %v309_v20 = vld [vmem:[#allocation2 + $0x18] sm:$0xff]  ;;  %1369 = vmatprep.subr.bf16.mxu0 %v1368_v56  ;;  %v641_v56 = vld [vmem:[%s2242_s7 + $0xf0] sm:$0xff] }
 0x10e   :  { %v363_v22 = vrot.slane %v309_v20, 1  ;;  %1115 = vmatprep.mubr.msk.f32.mxu0 %vm299_vm1, %v309_v20  ;;  %v635_v20 = vld [vmem:[%s2242_s7 + $0xc0] sm:$0xff]  ;;  %v1360_v60 = vpack.c.bf16 %v642_v57, %v641_v56 }
 0x10f   :  { %536 = vmatmul.mubr.f32.gmra.mrb[8].mxu0 %v1489_v13  ;;  %v1346_v13 = vpack.c.bf16 %v618_v12, %v617_v11 }
 0x110   :  { %v364_v25 = vsel %vm358_vm3, %v362_v23, %v363_v22  ;;  %v332_v26 = vld [vmem:[#allocation2 + $0x20] sm:$0x7]  ;;  %1371 = vmatpush3.bf16.msra.mxu0 %v1370_v59 }
 0x111   :  { %1111 = vmatprep.mubr.msk.f32.mxu1 %vm299_vm1, %v364_v25  ;;  %v311_v29 = vld [vmem:[#allocation2 + $0x28] sm:$0x3]  ;;  %v365_v31 = vrot.slane %v332_v26, 1  ;;  %v310_v32 = vld [vmem:[#allocation2 + $0x20] sm:$0x3]  ;;  %1373 = vmatprep.subr.bf16.mxu0 %v1372_v4 }
 0x112   :  { %v333_v30 = vld [vmem:[#allocation2 + $0x28] sm:$0x7]  ;;  %443 = vmatmul.mubr.f32.vlgmr.msra.gmra.mrb[6].mxu1 %v361_v28  ;;  %1116 = vmatprep.mubr.msk.f32.mxu0 %vm299_vm1, %v311_v29  ;;  %v619_v23 = vld [vmem:[%s2242_s7 + $0x40] sm:$0xff] }
 0x113   :  { %v367_v33 = vrot.slane %v333_v30, 1  ;;  %541 = vmatmul.mubr.f32.gmra.mrb[10].mxu0 %v310_v32  ;;  %v366_v35 = vsel %vm358_vm3, %v360_v24, %v365_v31  ;;  %1335 = vmatpush3.bf16.msra.mxu1 %v1334_v41  ;;  %v620_v24 = vld [vmem:[%s2242_s7 + $0x48] sm:$0xff]  ;;  %v667_v26 = vld [vmem:[%s2242_s7 + $0x1c0] sm:$0xff]  ;;  %v637_v32 = vld [vmem:[%s2242_s7 + $0xd0] sm:$0xff] }
 0x114   :  { %1337 = vmatprep.subr.bf16.mxu1 %v1336_v50  ;;  %1375 = vmatpush3.bf16.msra.mxu0 %v1374_v7  ;;  %v1350_v25 = vpack.c.bf16 %v620_v24, %v619_v23  ;;  %v668_v28 = vld [vmem:[%s2242_s7 + $0x1c8] sm:$0xff]  ;;  %v651_v30 = vld [vmem:[%s2242_s7 + $0x140] sm:$0xff]  ;;  %v653_v41 = vld [vmem:[%s2242_s7 + $0x150] sm:$0xff]  ;;  %v1396_v7 = vpack.c.bf16 %v692_v6, %v691_v5 }
 0x115   :  { %v368_v34 = vsel %vm358_vm3, %v363_v22, %v367_v33  ;;  %1377 = vmatprep.subr.bf16.mxu0 %v1376_v16  ;;  %v1348_v22 = vpack.c.bf16 %v636_v21, %v635_v20  ;;  %v1380_v29 = vpack.c.bf16 %v668_v28, %v667_v26  ;;  %v1386_v46 = vpack.c.bf16 %v654_v43, %v653_v41  ;;  %v671_v50 = vld [vmem:[%s2242_s7 + $0x1e0] sm:$0xff]  ;;  %v694_v5 = vld [vmem:[%s2242_s7 + $0x298] sm:$0xff]  ;;  %v708_v6 = vld [vmem:[%s2242_s7 + $0x308] sm:$0xff] }
 0x116   :  { %1112 = vmatprep.mubr.msk.f32.mxu1 %vm299_vm1, %v368_v34  ;;  %v638_v34 = vld [vmem:[%s2242_s7 + $0xd8] sm:$0xff]  ;;  %v1388_v55 = vpack.c.bf16 %v672_v52, %v671_v50  ;;  %v1117_v16 = vld [vmem:[%s2241_s6] ss:$0 sm:$0xff]  ;;  %v750_v50 = vunpack.c.l.s4 %v1538_v49  ;;  %v700_v49 = vld [vmem:[%s2242_s7 + $0x2c8] sm:$0xff] }
 0x117   :  { %448 = vmatmul.mubr.f32.gmra.mrb[8].mxu1 %v366_v35  ;;  %v621_v35 = vld [vmem:[%s2242_s7 + $0x50] sm:$0xff]  ;;  %v1352_v37 = vpack.c.bf16 %v638_v34, %v637_v32 }
 0x118   :  { %1113 = vmatprep.mubr.msk.f32.mxu1 %vm299_vm1, %v367_v33  ;;  %1339 = vmatpush3.bf16.msra.mxu1 %v1338_v53  ;;  %v1354_v38 = vpack.c.bf16 %v622_v36, %v621_v35  ;;  %v655_v53 = vld [vmem:[%s2242_s7 + $0x160] sm:$0xff] }
 0x119   :  { %1341 = vmatprep.subr.bf16.mxu1 %v1340_v62  ;;  %1379 = vmatpush3.bf16.msra.mxu0 %v1378_v19  ;;  %v1390_v59 = vpack.c.bf16 %v656_v54, %v655_v53  ;;  %v673_v62 = vld [vmem:[%s2242_s7 + $0x1f0] sm:$0xff] }
 0x11a   :  { %1381 = vmatprep.subr.bf16.mxu0 %v1380_v29  ;;  %v1392_v0 = vpack.c.bf16 %v674_v63, %v673_v62 }
 0x11b   :  { %453 = vmatmul.mubr.f32.gmra.mrb[10].mxu1 %v365_v31  ;;  %v652_v31 = vld [vmem:[%s2242_s7 + $0x148] sm:$0xff] }
 0x11c   :  { %1343 = vmatpush3.bf16.msra.mxu1 %v1342_v1  ;;  %v1382_v33 = vpack.c.bf16 %v652_v31, %v651_v30  ;;  %v657_v1 = vld [vmem:[%s2242_s7 + $0x170] sm:$0xff] }
 0x11d   :  { %1345 = vmatprep.subr.bf16.mxu1 %v1344_v10  ;;  %v1394_v4 = vpack.c.bf16 %v658_v2, %v657_v1  ;;  %v1428_v10 = vpack.c.bf16 %v724_v9, %v723_v8  ;;  %v676_v1 = vld [vmem:[%s2242_s7 + $0x208] sm:$0xff] }
 0x11e   :  { %1383 = vmatpush3.bf16.msra.mxu0 %v1382_v33 }
 0x11f   :  { %1385 = vmatprep.subr.bf16.mxu0 %v1384_v42 }
 0x120   :  { %1347 = vmatpush3.bf16.msra.mxu1 %v1346_v13 }
 0x121   :  { %1349 = vmatprep.subr.bf16.mxu1 %v1348_v22 }
 0x122   :  { %1387 = vmatpush3.bf16.msra.mxu0 %v1386_v46 }
 0x123   :  { %1389 = vmatprep.subr.bf16.mxu0 %v1388_v55 }
 0x124   :  { %1351 = vmatpush3.bf16.msra.mxu1 %v1350_v25 }
 0x125   :  { %1353 = vmatprep.subr.bf16.mxu1 %v1352_v37 }
 0x126   :  { %1391 = vmatpush3.bf16.msra.mxu0 %v1390_v59  ;;  %v751_v59 = vunpack.c.0.s8 %v750_v50 }
 0x127   :  { %1393 = vmatprep.subr.bf16.mxu0 %v1392_v0  ;;  %v675_v0 = vld [vmem:[%s2242_s7 + $0x200] sm:$0xff] }
 0x128   :  { %1355 = vmatpush3.bf16.msra.mxu1 %v1354_v38  ;;  %v754_v62 = vsub.s32 %v751_v59, %v1800_v27  ;;  %v707_v27 = vld [vmem:[%s2242_s7 + $0x300] sm:$0xff]  ;;  %v1398_v8 = vpack.c.bf16 %v676_v1, %v675_v0  ;;  %v716_v0 = vld [vmem:[%s2242_s7 + $0x348] sm:$0xff] }
 0x129   :  { %1357 = vmatprep.subr.bf16.mxu1 %v1356_v47 }
 0x12a   :  { %1395 = vmatpush3.bf16.msra.mxu0 %v1394_v4  ;;  %v693_v4 = vld [vmem:[%s2242_s7 + $0x290] sm:$0xff] }
 0x12b   :  { %1429 = vmatprep.subr.bf16.mxu0 %v1428_v10 }
 0x12c   :  { %1359 = vmatpush3.bf16.msra.mxu1 %v1358_v51 }
 0x12d   :  { %1361 = vmatprep.subr.bf16.mxu1 %v1360_v60 }
 0x130   :  { %1363 = vmatpush3.bf16.msra.mxu1 %v1362_v3 }
 0x131   :  { %1397 = vmatprep.subr.bf16.mxu1 %v1396_v7 }
 0x1de   :  { %v532_v11 = vpop.f32.mrb[6].mxu0 }
 0x1df   :  { %v534_v12 = vpop.f32.mrb[7].mxu0 }
 0x1e0   :  { %v726_v12 = vld [vmem:[%s2242_s7 + $0x398] sm:$0xff] }
 0x1e2   :  { %v537_v13 = vpop.f32.mrb[8].mxu0 }
 0x1e3   :  { %v539_v14 = vpop.f32.mrb[9].mxu0 }
 0x1e5   :  { %v444_v15 = vpop.f32.mrb[6].mxu1 }
 0x1e6   :  { %v533_v17 = vadd.f32 %v532_v11, %v444_v15  ;;  %v446_v18 = vpop.f32.mrb[7].mxu1  ;;  %v542_v19 = vpop.f32.mrb[10].mxu0  ;;  %v725_v11 = vld [vmem:[%s2242_s7 + $0x390] sm:$0xff] }
 0x1e7   :  { %v544_v20 = vpop.f32.mrb[11].mxu0  ;;  %v677_v15 = vld [vmem:[%s2242_s7 + $0x210] sm:$0xff] }
 0x1e8   :  { %v553_v21 = vadd.f32 %v1117_v16, %v533_v17  ;;  %v695_v20 = vld [vmem:[%s2242_s7 + $0x2a0] sm:$0xff] }
 0x1ea   :  { %v449_v22 = vpop.f32.mrb[8].mxu1  ;;  %v1118_v23 = vmul.f32 -1.442695, %v553_v21  ;;  %v696_v21 = vld [vmem:[%s2242_s7 + $0x2a8] sm:$0xff] }
 0x1eb   :  { %v538_v24 = vadd.f32 %v537_v13, %v449_v22  ;;  %v451_v25 = vpop.f32.mrb[9].mxu1  ;;  %v1400_v13 = vpack.c.bf16 %v694_v5, %v693_v4  ;;  %v685_v5 = vld [vmem:[%s2242_s7 + $0x250] sm:$0xff] }
 0x1ec   :  { %1496 = vpow2.f32 %v1118_v23  ;;  %v1432_v23 = vpack.c.bf16 %v726_v12, %v725_v11  ;;  %v709_v25 = vld [vmem:[%s2242_s7 + $0x310] sm:$0xff]  ;;  %v718_v11 = vld [vmem:[%s2242_s7 + $0x358] sm:$0xff] }
 0x1ed   :  { %v554_v26 = vadd.f32 %v1117_v16, %v538_v24 }
 0x1ee   :  { %v454_v28 = vpop.f32.mrb[10].mxu1 }
 0x1ef   :  { %v1119_v29 = vmul.f32 -1.442695, %v554_v26  ;;  %v543_v30 = vadd.f32 %v542_v19, %v454_v28  ;;  %v456_v31 = vpop.f32.mrb[11].mxu1  ;;  %v1430_v19 = vpack.c.bf16 %v708_v6, %v707_v27  ;;  %v710_v26 = vld [vmem:[%s2242_s7 + $0x318] sm:$0xff] }
 0x1f0   :  { %v686_v27 = vld [vmem:[%s2242_s7 + $0x258] sm:$0xff] }
 0x1f1   :  { %1498 = vpow2.f32 %v1119_v29  ;;  %v555_v32 = vadd.f32 %v1117_v16, %v543_v30  ;;  %v678_v16 = vld [vmem:[%s2242_s7 + $0x218] sm:$0xff]  ;;  %v727_v29 = vld [vmem:[%s2242_s7 + $0x3a0] sm:$0xff]  ;;  %v728_v30 = vld [vmem:[%s2242_s7 + $0x3a8] sm:$0xff]  ;;  %v1418_v12 = vpack.c.bf16 %v686_v27, %v685_v5 }
 0x1f2   :  { %v1402_v28 = vpack.c.bf16 %v678_v16, %v677_v15  ;;  %v736_v15 = vld [vmem:[%s2242_s7 + $0x3e8] sm:$0xff] }
 0x1f3   :  { %v1120_v33 = vmul.f32 -1.442695, %v555_v32  ;;  %v1404_v32 = vpack.c.bf16 %v696_v21, %v695_v20  ;;  %v705_v20 = vld [vmem:[%s2242_s7 + $0x2f0] sm:$0xff]  ;;  %v706_v21 = vld [vmem:[%s2242_s7 + $0x2f8] sm:$0xff] }
 0x1f5   :  { %1500 = vpow2.f32 %v1120_v33  ;;  %v679_v33 = vld [vmem:[%s2242_s7 + $0x220] sm:$0xff] }
 0x1f6   :  { %v1497_v34 = vpop.eup %1496 }
 0x1f7   :  { %v565_v35 = vadd.f32 1.0, %v1497_v34  ;;  %v680_v34 = vld [vmem:[%s2242_s7 + $0x228] sm:$0xff] }
 0x1f9   :  { %1502 = vrcp.f32 %v565_v35  ;;  %v1434_v35 = vpack.c.bf16 %v710_v26, %v709_v25  ;;  %v720_v25 = vld [vmem:[%s2242_s7 + $0x368] sm:$0xff] }
 0x1fb   :  { %v1499_v36 = vpop.eup %1498 }
 0x1fc   :  { %v566_v37 = vadd.f32 1.0, %v1499_v36  ;;  %v697_v36 = vld [vmem:[%s2242_s7 + $0x2b0] sm:$0xff] }
 0x1fe   :  { %1504 = vrcp.f32 %v566_v37  ;;  %v698_v37 = vld [vmem:[%s2242_s7 + $0x2b8] sm:$0xff] }
 0x1ff   :  { %v1501_v38 = vpop.eup %1500 }
 0x200   :  { %v567_v39 = vadd.f32 1.0, %v1501_v38  ;;  %v1436_v38 = vpack.c.bf16 %v728_v30, %v727_v29  ;;  %v738_v29 = vld [vmem:[%s2242_s7 + $0x3f8] sm:$0xff]  ;;  %v1424_v30 = vpack.c.bf16 %v706_v21, %v705_v20 }
 0x202   :  { %1506 = vrcp.f32 %v567_v39  ;;  %v711_v39 = vld [vmem:[%s2242_s7 + $0x320] sm:$0xff] }
 0x203   :  { %v1503_v40 = vpop.eup %1502 }
 0x204   :  { %574 = vst [vmem:[#allocation3] sm:$0xff] %v1503_v40  ;;  %v712_v40 = vld [vmem:[%s2242_s7 + $0x328] sm:$0xff] }
 0x208   :  { %v1505_v41 = vpop.eup %1504 }
 0x209   :  { %575 = vst [vmem:[#allocation3 + $0x8] sm:$0xff] %v1505_v41  ;;  %v1406_v41 = vpack.c.bf16 %v680_v34, %v679_v33 }
 0x20b   :  { %v577_v43 = vld [vmem:[#allocation3] sm:$0x1]  ;;  %v579_v44 = vld [vmem:[#allocation3 + $0x1] sm:$0x1]  ;;  %v581_v45 = vld [vmem:[#allocation3 + $0x2] sm:$0x1] }
 0x20c   :  { %v1507_v42 = vpop.eup %1506  ;;  %578 = vst [vmem:[#allocation4] sm:$0x1] %v577_v43  ;;  %580 = vst [vmem:[#allocation4 + $0x2] sm:$0x1] %v579_v44  ;;  %v583_v46 = vld [vmem:[#allocation3 + $0x3] sm:$0x1]  ;;  %v1408_v44 = vpack.c.bf16 %v698_v37, %v697_v36 }
 0x20d   :  { %576 = vst [vmem:[#allocation3 + $0x10] sm:$0x3] %v1507_v42  ;;  %582 = vst [vmem:[#allocation4 + $0x4] sm:$0x1] %v581_v45  ;;  %v585_v47 = vld [vmem:[#allocation3 + $0x4] sm:$0x1] }
 0x20e   :  { %v587_v48 = vld [vmem:[#allocation3 + $0x5] sm:$0x1]  ;;  %584 = vst [vmem:[#allocation4 + $0x6] sm:$0x1] %v583_v46  ;;  %586 = vst [vmem:[#allocation4 + $0x8] sm:$0x1] %v585_v47  ;;  %v1438_v47 = vpack.c.bf16 %v712_v40, %v711_v39 }
 0x20f   :  { %588 = vst [vmem:[#allocation4 + $0xa] sm:$0x1] %v587_v48  ;;  %v589_v51 = vld [vmem:[#allocation3 + $0x6] sm:$0x1]  ;;  %v591_v52 = vld [vmem:[#allocation3 + $0x7] sm:$0x1] }
 0x210   :  { %590 = vst [vmem:[#allocation4 + $0xc] sm:$0x1] %v589_v51  ;;  %592 = vst [vmem:[#allocation4 + $0xe] sm:$0x1] %v591_v52  ;;  %v593_v53 = vld [vmem:[#allocation3 + $0xa] sm:$0x1] }
 0x211   :  { %v595_v54 = vld [vmem:[#allocation3 + $0xb] sm:$0x1]  ;;  %v597_v55 = vld [vmem:[#allocation3 + $0xc] sm:$0x1]  ;;  %594 = vst [vmem:[#allocation4 + $0x1] sm:$0x1] %v593_v53 }
 0x212   :  { %596 = vst [vmem:[#allocation4 + $0x3] sm:$0x1] %v595_v54  ;;  %598 = vst [vmem:[#allocation4 + $0x5] sm:$0x1] %v597_v55  ;;  %v599_v56 = vld [vmem:[#allocation3 + $0xd] sm:$0x1] }
 0x213   :  { %v601_v57 = vld [vmem:[#allocation3 + $0xe] sm:$0x1]  ;;  %v603_v58 = vld [vmem:[#allocation3 + $0xf] sm:$0x1]  ;;  %600 = vst [vmem:[#allocation4 + $0x7] sm:$0x1] %v599_v56 }
 0x214   :  { %602 = vst [vmem:[#allocation4 + $0x9] sm:$0x1] %v601_v57  ;;  %604 = vst [vmem:[#allocation4 + $0xb] sm:$0x1] %v603_v58  ;;  %v605_v60 = vld [vmem:[#allocation3 + $0x10] sm:$0x1] }
 0x215   :  { %v607_v61 = vld [vmem:[#allocation3 + $0x11] sm:$0x1]  ;;  %606 = vst [vmem:[#allocation4 + $0xd] sm:$0x1] %v605_v60  ;;  %v729_v42 = vld [vmem:[%s2242_s7 + $0x3b0] sm:$0xff]  ;;  %v730_v43 = vld [vmem:[%s2242_s7 + $0x3b8] sm:$0xff] }
 0x216   :  { %608 = vst [vmem:[#allocation4 + $0xf] sm:$0x1] %v607_v61  ;;  %v681_v45 = vld [vmem:[%s2242_s7 + $0x230] sm:$0xff]  ;;  %v682_v46 = vld [vmem:[%s2242_s7 + $0x238] sm:$0xff]  ;;  %v699_v48 = vld [vmem:[%s2242_s7 + $0x2c0] sm:$0xff]  ;;  %v1440_v50 = vpack.c.bf16 %v730_v43, %v729_v42 }
 0x217   :  { %v713_v51 = vld [vmem:[%s2242_s7 + $0x330] sm:$0xff]  ;;  %v714_v52 = vld [vmem:[%s2242_s7 + $0x338] sm:$0xff]  ;;  %v1410_v53 = vpack.c.bf16 %v682_v46, %v681_v45  ;;  %v731_v54 = vld [vmem:[%s2242_s7 + $0x3c0] sm:$0xff]  ;;  %v1412_v56 = vpack.c.bf16 %v700_v49, %v699_v48 }
 0x218   :  { %v732_v55 = vld [vmem:[%s2242_s7 + $0x3c8] sm:$0xff]  ;;  %v683_v57 = vld [vmem:[%s2242_s7 + $0x240] sm:$0xff]  ;;  %v1442_v59 = vpack.c.bf16 %v714_v52, %v713_v51  ;;  %v701_v60 = vld [vmem:[%s2242_s7 + $0x2d0] sm:$0xff] }
 0x219   :  { %v684_v58 = vld [vmem:[%s2242_s7 + $0x248] sm:$0xff]  ;;  %v702_v61 = vld [vmem:[%s2242_s7 + $0x2d8] sm:$0xff]  ;;  %v1121_v40 = vld [vmem:[%s2243_s8] ss:$0 sm:$0xff] }
 0x21a   :  { %v609_v63 = vld [vmem:[#allocation4] sm:$0xff]  ;;  %v1414_v1 = vpack.c.bf16 %v684_v58, %v683_v57  ;;  %v1416_v4 = vpack.c.bf16 %v702_v61, %v701_v60  ;;  %v722_v36 = vld [vmem:[%s2242_s7 + $0x378] sm:$0xff] }
 0x21b   :  { %v755_v2 = vrot.slane %v609_v63, %v754_v62  ;;  %v748_v3 = vcombine.high %v609_v63, %v609_v63  ;;  %v715_v63 = vld [vmem:[%s2242_s7 + $0x340] sm:$0xff] }
 0x21c   :  { %v1446_v6 = vpack.c.bf16 %v716_v0, %v715_v63 }
 0x21d   :  { %v763_v7 = vcombine.high %v755_v2, %v755_v2  ;;  %v762_v9 = vrot.slane %v748_v3, %v754_v62  ;;  %v610_v10 = vld [vmem:[#allocation4 + $0x8] sm:$0xff]  ;;  %v734_v3 = vld [vmem:[%s2242_s7 + $0x3d8] sm:$0xff] }
 0x21e   :  { %v2051_v14 = vrot.slane %v610_v10, %v754_v62  ;;  %v765_v17 = vcombine.high %v610_v10, %v610_v10  ;;  %v717_v10 = vld [vmem:[%s2242_s7 + $0x350] sm:$0xff] }
 0x21f   :  { %854 = vmatprep.mubr.f32.mxu1 %v763_v7  ;;  %v764_v18 = vcombine.high %v762_v9, %v762_v9  ;;  %v703_v7 = vld [vmem:[%s2242_s7 + $0x2e0] sm:$0xff] }
 0x220   :  { %855 = vmatmul.mubr.f32.vlgmr.msra.gmra.mrb[12].mxu1 %v755_v2  ;;  %v780_v22 = vcombine.high %v2051_v14, %v2051_v14  ;;  %v2067_v24 = vrot.slane %v765_v17, %v754_v62  ;;  %v1444_v62 = vpack.c.bf16 %v732_v55, %v731_v54  ;;  %v733_v2 = vld [vmem:[%s2242_s7 + $0x3d0] sm:$0xff]  ;;  %v687_v17 = vld [vmem:[%s2242_s7 + $0x260] sm:$0xff] }
 0x221   :  { %1399 = vmatpush3.bf16.msra.mxu1 %v1398_v8  ;;  %924 = vmatprep.mubr.f32.mxu0 %v764_v18  ;;  %v704_v8 = vld [vmem:[%s2242_s7 + $0x2e8] sm:$0xff] }
 0x222   :  { %925 = vmatmul.mubr.f32.vlgmr.msra.gmra.mrb[12].mxu0 %v762_v9  ;;  %1401 = vmatprep.subr.bf16.mxu1 %v1400_v13  ;;  %v781_v31 = vcombine.high %v2067_v24, %v2067_v24  ;;  %v1448_v9 = vpack.c.bf16 %v734_v3, %v733_v2  ;;  %v735_v13 = vld [vmem:[%s2242_s7 + $0x3e0] sm:$0xff]  ;;  %v1420_v16 = vpack.c.bf16 %v704_v8, %v703_v7  ;;  %v688_v18 = vld [vmem:[%s2242_s7 + $0x268] sm:$0xff] }
 0x223   :  { %1431 = vmatpush3.bf16.msra.mxu0 %v1430_v19  ;;  %994 = vmatprep.mubr.f32.mxu1 %v780_v22  ;;  %v1450_v19 = vpack.c.bf16 %v718_v11, %v717_v10  ;;  %v1452_v22 = vpack.c.bf16 %v736_v15, %v735_v13  ;;  %v1422_v26 = vpack.c.bf16 %v688_v18, %v687_v17 }
 0x224   :  { %1433 = vmatprep.subr.bf16.mxu0 %v1432_v23  ;;  %1064 = vmatprep.mubr.f32.mxu0 %v781_v31  ;;  %v719_v23 = vld [vmem:[%s2242_s7 + $0x360] sm:$0xff]  ;;  %v689_v31 = vld [vmem:[%s2242_s7 + $0x270] sm:$0xff] }
 0x225   :  { %1403 = vmatpush3.bf16.msra.mxu1 %v1402_v28  ;;  %v737_v28 = vld [vmem:[%s2242_s7 + $0x3f0] sm:$0xff]  ;;  %v1454_v33 = vpack.c.bf16 %v720_v25, %v719_v23 }
 0x226   :  { %1405 = vmatprep.subr.bf16.mxu1 %v1404_v32  ;;  %v690_v32 = vld [vmem:[%s2242_s7 + $0x278] sm:$0xff]  ;;  %v1456_v34 = vpack.c.bf16 %v738_v29, %v737_v28 }
 0x227   :  { %1435 = vmatpush3.bf16.msra.mxu0 %v1434_v35  ;;  %v721_v35 = vld [vmem:[%s2242_s7 + $0x370] sm:$0xff]  ;;  %v1426_v37 = vpack.c.bf16 %v690_v32, %v689_v31  ;;  %s1539_s7 = smov [#allocation5]  }
 0x228   :  { %1437 = vmatprep.subr.bf16.mxu0 %v1436_v38  ;;  %v1458_v38 = vpack.c.bf16 %v722_v36, %v721_v35  ;;  %s1091_s8 = sshll.u32 %s1539_s7, 4  ;;  %s1092_s8 = int_to_ptr.vmem [resolvable:$true] %s1091_s8 }
 0x229   :  { %1407 = vmatpush3.bf16.msra.mxu1 %v1406_v41  ;;  %s1512_s27 = scalar_lea.vmem %s1092_s8, 32  ;;  %p1517_p1 = scmp.lt.s32.totalorder %s1092_s8, %s1092_s8 }
 0x22a   :  { %1409 = vmatprep.subr.bf16.mxu1 %v1408_v44  ;;  %p1513_p0 = scmp.ne.s32.totalorder %s1092_s8, %s1512_s27  ;;  %p1518_p2 = scmp.lt.s32.totalorder %s1512_s27, %s1512_s27 }
 0x22b   :  { %1439 = vmatpush3.bf16.msra.mxu0 %v1438_v47 }
 0x22c   :  { %1441 = vmatprep.subr.bf16.mxu0 %v1440_v50  ;;  %p1519_p3 = por %p1518_p2, %p1517_p1 }
 0x22d   :  { %1411 = vmatpush3.bf16.msra.mxu1 %v1410_v53 }
 0x22e   :  { %1413 = vmatprep.subr.bf16.mxu1 %v1412_v56  ;;  %p1520_p4 = pnand %p1519_p3, %p1513_p0 }
 0x22f   :  { %1443 = vmatpush3.bf16.msra.mxu0 %v1442_v59 }
 0x230   :  { %1445 = vmatprep.subr.bf16.mxu0 %v1444_v62 }
 0x231   :  { %1415 = vmatpush3.bf16.msra.mxu1 %v1414_v1 }
 0x232   :  { %1417 = vmatprep.subr.bf16.mxu1 %v1416_v4 }
 0x233   :  { %1447 = vmatpush3.bf16.msra.mxu0 %v1446_v6 }
 0x234   :  { %1449 = vmatprep.subr.bf16.mxu0 %v1448_v9 }
 0x235   :  { %1419 = vmatpush3.bf16.msra.mxu1 %v1418_v12 }
 0x236   :  { %1421 = vmatprep.subr.bf16.mxu1 %v1420_v16 }
 0x237   :  { %1451 = vmatpush3.bf16.msra.mxu0 %v1450_v19 }
 0x238   :  { %1453 = vmatprep.subr.bf16.mxu0 %v1452_v22 }
 0x239   :  { %1423 = vmatpush3.bf16.msra.mxu1 %v1422_v26 }
 0x23a   :  { %1425 = vmatprep.subr.bf16.mxu1 %v1424_v30 }
 0x23b   :  { %1455 = vmatpush3.bf16.msra.mxu0 %v1454_v33 }
 0x23c   :  { %1457 = vmatprep.subr.bf16.mxu0 %v1456_v34 }
 0x23d   :  { %1427 = vmatpush3.bf16.msra.mxu1 %v1426_v37 }
 0x23f   :  { %1459 = vmatpush3.bf16.msra.mxu0 %v1458_v38 }
 0x240   :  { %995 = vmatmul.mubr.f32.vlgmr.msra.gmra.mrb[14].mxu1 %v2051_v14 }
 0x242   :  { %1065 = vmatmul.mubr.f32.vlgmr.msra.gmra.mrb[14].mxu0 %v2067_v24 }
 0x2f3   :  { %v1154_v39 = vpop.f32.mrb[12].mxu1 }
 0x2f4   :  { %v1155_v41 = vpop.f32.mrb[13].mxu1 }
 0x2f5   :  { %v1156_v42 = vadd.f32 %v1155_v41, %v1154_v39  ;;  %v1189_v43 = vpop.f32.mrb[12].mxu0 }
 0x2f6   :  { %v1190_v44 = vpop.f32.mrb[13].mxu0 }
 0x2f7   :  { %v857_v45 = vadd.f32 %v1156_v42, %v1121_v40  ;;  %v1191_v46 = vadd.f32 %v1190_v44, %v1189_v43 }
 0x2f9   :  { %v927_v47 = vadd.f32 %v1191_v46, %v857_v45 }
 0x313   :  { %v1224_v48 = vpop.f32.mrb[14].mxu1 }
 0x314   :  { %v1225_v49 = vpop.f32.mrb[15].mxu1 }
 0x315   :  { %v1226_v50 = vadd.f32 %v1225_v49, %v1224_v48  ;;  %v1259_v51 = vpop.f32.mrb[14].mxu0 }
 0x316   :  { %v1260_v52 = vpop.f32.mrb[15].mxu0 }
 0x317   :  { %v997_v14 = vadd.f32 %v1226_v50, %v927_v47  ;;  %v1261_v53 = vadd.f32 %v1260_v52, %v1259_v51 }
 0x319   :  { %v1067_v24 = vadd.f32 %v1261_v53, %v997_v14 }
 0x31b   :  { %v1071_v54 = vsel %vm1070_vm4, %v1067_v24, -inf }
 0x31c   :  { %1072 = vmax.xlane.f32.xlu0 %v1071_v54 }
 0x3a9   :  { %v1073_v55 = vpop.xlane.xlu0 %1072 }
 0x3aa   :  { %v1074_v56 = vsub.f32 %v1067_v24, %v1073_v55 }
 0x3ac   :  { %v1075_v57 = vmul.f32 1.442695, %v1074_v56 }
 0x3ae   :  { %1508 = vpow2.f32 %v1075_v57 }
 0x3b8   :  { %v1509_v58 = vpop.eup %1508 }
 0x3b9   :  { %v1077_v59 = vsel %vm1070_vm4, %v1509_v58, 0.0 }
 0x3ba   :  { %1078 = vadd.xlane.f32.xlu0 %v1077_v59 }
 0x447   :  { %v1079_v60 = vpop.xlane.xlu0 %1078 }
 0x448   :  { %1510 = vlog2.f32 %v1079_v60 }
 0x452   :  { %v1511_v61 = vpop.eup %1510 }
 0x453   :  { %v1081_v62 = vmul.f32 0.6931472, %v1511_v61 }
 0x455   :  { %v1082_v63 = vadd.f32 %v1081_v62, %v1073_v55 }
 0x457   :  { %v1083_v0 = vsub.f32 %v1067_v24, %v1082_v63 }
 0x459   :  { %1084 = vst.msk [vmem:[#allocation5] sm:$0x3] %vm1070_vm4, %v1083_v0 }
 0x45a   :  { %1523 = shalt.err (!%p1520_p4)
}
 0x45b   :  { %s1524_s30 = scalar_lea.hbm %s2244_s9, 32 }
 0x45c   :  { %p1525_p5 = scmp.ne.s32.totalorder %s2244_s9, %s1524_s30  ;;  %p1528_p6 = scmp.lt.u32.totalorder %s1524_s30, %s2244_s9 }
 0x45e   :  { %p1530_p7 = pnand %p1528_p6, %p1525_p5 }
 0x460   :  { %1533 = shalt.err (!%p1530_p7)
}
 0x461   :  { %1094 = dma.vmem_to_hbm [thread:$0]  %s1092_s8, 32, %s2244_s9, [#allocation6]  }
 0x462   :  { %1534 = dma.done.wait [#allocation6], 32  }
 0x463   :  { %1535 = vsyncadd [#allocation6], 4294967264 }
 0x464   :  { %1098 = vsyncpa [#allocation6], 1 }

</bundles_post_ra>
